<compile_context>
chip_gen: v5e
topology: v5e:2x2
jax: 0.10.0
libtpu: 0.0.40
codegen_flags: <defaults>
</compile_context>

<pallas_src>
import functools

import jax
import jax.numpy as jnp
from jax.experimental import pallas as pl
from jax.experimental.pallas import tpu as pltpu


def _round_up(x, m):
    return (x + m - 1) // m * m


def _pick_batch_tile(B, batch_tile):
    """Batch tile: multiple of 8 sublanes.  VMEM is not the binding constraint here
    (weight slabs are ~O(100 KiB)); `batch_tile` mostly caps the (TB, 3H)/(TB, A_PAD)
    f32 intermediates to avoid vreg/VMEM spill.  For B >= 16 we guarantee >= 2 grid
    steps so the "parallel" batch axis can shard across both TensorCores on v7x."""
    tb = _round_up(B, 8)
    if B >= 16:
        tb = min(tb, _round_up((B + 1) // 2, 8))
    return min(tb, batch_tile)


def default_mm_dtype():
    """bf16 matmul operands on v6e/v7x (full-rate MXU, half the DMA bytes);
    f32 on v5e and older (no bf16 VPU there and K=IN/H already fills the 128-deep MXU)."""
    kind = jax.devices()[0].device_kind.lower()
    if any(s in kind for s in ("v2", "v3", "v4", "v5")):
        return jnp.float32
    return jnp.bfloat16


# ----------------------------------------------------------------------------
# Kernel bodies
# ----------------------------------------------------------------------------

def _gru_cell(x, h_f32, fc1_ref, gi_ref, gh_ref, fc2_ref, *, in_dim, hidden_dim):
    """One fc1 -> ReLU -> GRUCell -> fc2 step on a (TB, .) tile.

    x:      (TB, IN_pad)  mm_dtype
    h_f32:  (TB, H)       float32
    returns (q (TB, A_PAD) f32, h_new (TB, H) f32)
    """
    IN, H = in_dim, hidden_dim
    mm = x.dtype

    # ---- fc1 + ReLU  (slab rows [0:IN]=W, row IN=bias; IN is a multiple of 8) ----
    fc1_w = fc1_ref[0:IN, :]
    fc1_b = fc1_ref[IN:IN + 1, :].astype(jnp.float32)
    x1 = jnp.dot(x, fc1_w, preferred_element_type=jnp.float32) + fc1_b
    x1 = jnp.maximum(x1, 0.0)

    # ---- GRU gates: two (TB,H)@(H,3H) dots, columns [r | z | n] ------------------
    gi = jnp.dot(x1.astype(mm), gi_ref[0:H, :],
                 preferred_element_type=jnp.float32) + gi_ref[H:H + 1, :].astype(jnp.float32)
    gh = jnp.dot(h_f32.astype(mm), gh_ref[0:H, :],
                 preferred_element_type=jnp.float32) + gh_ref[H:H + 1, :].astype(jnp.float32)

    # one lane-dense sigmoid over the first 2H (=128 for H=64) columns
    rz = jax.nn.sigmoid(gi[:, 0:2 * H] + gh[:, 0:2 * H])
    r = rz[:, 0:H]
    z = rz[:, H:2 * H]
    n = jnp.tanh(gi[:, 2 * H:3 * H] + r * gh[:, 2 * H:3 * H])
    h_new = n + z * (h_f32 - n)          # == (1 - z) * n + z * h

    # ---- fc2 (lane-dense padded Q output) ----------------------------------------
    fc2_w = fc2_ref[0:H, :]
    fc2_b = fc2_ref[H:H + 1, :].astype(jnp.float32)
    q = jnp.dot(h_new.astype(mm), fc2_w, preferred_element_type=jnp.float32) + fc2_b
    return q, h_new


def rnn_agent_step_kernel(x_ref, h_ref, fc1_ref, gi_ref, gh_ref, fc2_ref,
                          q_ref, h_out_ref, *, in_dim, hidden_dim):
    q, h_new = _gru_cell(x_ref[...], h_ref[...].astype(jnp.float32),
                         fc1_ref, gi_ref, gh_ref, fc2_ref,
                         in_dim=in_dim, hidden_dim=hidden_dim)
    q_ref[...] = q.astype(q_ref.dtype)
    h_out_ref[...] = h_new.astype(h_out_ref.dtype)


def rnn_agent_seq_kernel(x_ref, h0_ref, fc1_ref, gi_ref, gh_ref, fc2_ref,
                         q_ref, hT_ref, h_sc, *, in_dim, hidden_dim):
    """One (batch_tile, timestep) grid point of the rollout.  h carried in VMEM scratch."""
    t = pl.program_id(1)

    @pl.when(t == 0)
    def _():
        h_sc[...] = h0_ref[...].astype(jnp.float32)

    q, h_new = _gru_cell(x_ref[0], h_sc[...], fc1_ref, gi_ref, gh_ref, fc2_ref,
                         in_dim=in_dim, hidden_dim=hidden_dim)
    q_ref[0] = q.astype(q_ref.dtype)
    h_sc[...] = h_new

    @pl.when(t == pl.num_programs(1) - 1)
    def _():
        hT_ref[...] = h_new.astype(hT_ref.dtype)


# ----------------------------------------------------------------------------
# Parameter init / packing
# ----------------------------------------------------------------------------

def init_params(key, input_shape, hidden_dim, n_actions):
    """PyTorch-style uniform(-1/sqrt(fan_in), 1/sqrt(fan_in)) init.
    Weights stored TRANSPOSED relative to PyTorch, i.e. (in, out)."""
    ks = jax.random.split(key, 16)

    def u(k, shape, fan_in):
        bound = 1.0 / jnp.sqrt(jnp.float32(fan_in))
        return jax.random.uniform(k, shape, jnp.float32, -bound, bound)

    H = hidden_dim
    return {
        "fc1_w": u(ks[0], (input_shape, H), input_shape),
        "fc1_b": u(ks[1], (1, H), input_shape),
        "w_ir": u(ks[2], (H, H), H), "w_iz": u(ks[3], (H, H), H), "w_in": u(ks[4], (H, H), H),
        "b_ir": u(ks[5], (1, H), H), "b_iz": u(ks[6], (1, H), H), "b_in": u(ks[7], (1, H), H),
        "w_hr": u(ks[8], (H, H), H), "w_hz": u(ks[9], (H, H), H), "w_hn": u(ks[10], (H, H), H),
        "b_hr": u(ks[11], (1, H), H), "b_hz": u(ks[12], (1, H), H), "b_hn": u(ks[13], (1, H), H),
        "fc2_w": u(ks[14], (H, n_actions), H),
        "fc2_b": u(ks[15], (1, n_actions), H),
    }


def pack_params(params, mm_dtype=jnp.float32):
    """One-time packing of the 18 parameter arrays into 4 W+b slabs (do this at
    parameter-load time, not per forward call).

    fc1   : (IN_pad + 1, H)    rows [0:IN]=W, zero-pad to IN_pad, row IN_pad=bias
    gru_i : (H + 1, 3H)        cols [r|z|n], bias row = [b_ir+b_hr | b_iz+b_hz | b_in]
    gru_h : (H + 1, 3H)        cols [r|z|n], bias row = [0 | 0 | b_hn]
    fc2   : (H + 1, A_PAD)     A padded to 128 -> lane-dense unmasked stores
    """
    IN, H = params["fc1_w"].shape
    A = params["fc2_w"].shape[1]
    IN_pad = _round_up(IN, 8)
    A_pad = _round_up(max(A, 128), 128)

    fc1_w = jnp.pad(params["fc1_w"], ((0, IN_pad - IN), (0, 0)))
    fc1_slab = jnp.concatenate([fc1_w, params["fc1_b"]], axis=0)

    gi_w = jnp.concatenate([params["w_ir"], params["w_iz"], params["w_in"]], axis=1)
    gi_b = jnp.concatenate([params["b_ir"] + params["b_hr"],
                            params["b_iz"] + params["b_hz"],
                            params["b_in"]], axis=1)
    gi_slab = jnp.concatenate([gi_w, gi_b], axis=0)

    gh_w = jnp.concatenate([params["w_hr"], params["w_hz"], params["w_hn"]], axis=1)
    gh_b = jnp.concatenate([jnp.zeros((1, 2 * H), jnp.float32), params["b_hn"]], axis=1)
    gh_slab = jnp.concatenate([gh_w, gh_b], axis=0)

    fc2_w = jnp.pad(params["fc2_w"], ((0, 0), (0, A_pad - A)))
    fc2_b = jnp.pad(params["fc2_b"], ((0, 0), (0, A_pad - A)))
    fc2_slab = jnp.concatenate([fc2_w, fc2_b], axis=0)

    # NOTE(bf16 path): biases live in the bf16 slabs, so they are bf16-rounded before
    # being re-promoted to f32 in-kernel; gate math itself stays f32.
    return {
        "fc1": fc1_slab.astype(mm_dtype),
        "gru_i": gi_slab.astype(mm_dtype),
        "gru_h": gh_slab.astype(mm_dtype),
        "fc2": fc2_slab.astype(mm_dtype),
        "in_dim": IN, "in_pad": IN_pad, "hidden_dim": H,
        "n_actions": A, "a_pad": A_pad,
    }


# ----------------------------------------------------------------------------
# Wrappers
# ----------------------------------------------------------------------------

def rnn_agent_forward(inputs, hidden_state, packed, *, batch_tile=1024,
                      out_dtype=jnp.float32):
    """Single step, matching RNNAgent.forward.
    inputs: (B, input_shape); hidden_state: anything reshapable to (B, H)."""
    IN, IN_pad = packed["in_dim"], packed["in_pad"]
    H = packed["hidden_dim"]
    A, A_pad = packed["n_actions"], packed["a_pad"]
    mm_dtype = packed["fc1"].dtype

    B = inputs.shape[0]
    assert inputs.shape[1] == IN
    h_in = hidden_state.reshape(-1, H)
    assert h_in.shape[0] == B

    TB = _pick_batch_tile(B, batch_tile)
    B_pad = _round_up(B, TB)

    x = inputs.astype(mm_dtype)
    h = h_in.astype(mm_dtype)
    if IN_pad != IN:
        x = jnp.pad(x, ((0, 0), (0, IN_pad - IN)))
    if B_pad != B:
        x = jnp.pad(x, ((0, B_pad - B), (0, 0)))
        h = jnp.pad(h, ((0, B_pad - B), (0, 0)))

    kernel = functools.partial(rnn_agent_step_kernel, in_dim=IN_pad, hidden_dim=H)

    # Update the recurrent state in place when shapes/dtypes line up (f32 path).
    io_aliases = {1: 1} if (mm_dtype == jnp.float32) else {}

    q_pad, h_out = pl.pallas_call(
        kernel,
        out_shape=(
            jax.ShapeDtypeStruct((B_pad, A_pad), out_dtype),
            jax.ShapeDtypeStruct((B_pad, H), jnp.float32),
        ),
        grid=(B_pad // TB,),
        in_specs=[
            pl.BlockSpec((TB, IN_pad), lambda i: (i, 0)),       # x: streamed per batch tile
            pl.BlockSpec((TB, H), lambda i: (i, 0)),            # h: streamed per batch tile
            pl.BlockSpec(packed["fc1"].shape, lambda i: (0, 0)),    # weights: VMEM-resident
            pl.BlockSpec(packed["gru_i"].shape, lambda i: (0, 0)),
            pl.BlockSpec(packed["gru_h"].shape, lambda i: (0, 0)),
            pl.BlockSpec(packed["fc2"].shape, lambda i: (0, 0)),
        ],
        out_specs=(
            pl.BlockSpec((TB, A_pad), lambda i: (i, 0)),
            pl.BlockSpec((TB, H), lambda i: (i, 0)),
        ),
        input_output_aliases=io_aliases,
        compiler_params=pltpu.CompilerParams(dimension_semantics=("parallel",)),
    )(x, h, packed["fc1"], packed["gru_i"], packed["gru_h"], packed["fc2"])

    # NOTE: padded batch rows [B:B_pad] hold arbitrary (finite) values and are sliced
    # off here; never feed the unsliced padded h back into the recurrence.
    return q_pad[:B, :A], h_out[:B]


def rnn_agent_rollout(inputs_seq, hidden_state, packed, *, batch_tile=1024,
                      out_dtype=jnp.float32):
    """T recurrent steps in ONE kernel launch.
    inputs_seq: (T, B, input_shape); hidden_state: reshapable to (B, H).
    Returns (q_seq (T, B, n_actions), h_final (B, H))."""
    IN, IN_pad = packed["in_dim"], packed["in_pad"]
    H = packed["hidden_dim"]
    A, A_pad = packed["n_actions"], packed["a_pad"]
    mm_dtype = packed["fc1"].dtype

    T, B = inputs_seq.shape[0], inputs_seq.shape[1]
    assert inputs_seq.shape[2] == IN
    h_in = hidden_state.reshape(-1, H)
    assert h_in.shape[0] == B

    TB = _pick_batch_tile(B, batch_tile)
    B_pad = _round_up(B, TB)

    x = inputs_seq.astype(mm_dtype)
    h0 = h_in.astype(mm_dtype)
    if IN_pad != IN:
        x = jnp.pad(x, ((0, 0), (0, 0), (0, IN_pad - IN)))
    if B_pad != B:
        x = jnp.pad(x, ((0, 0), (0, B_pad - B), (0, 0)))
        h0 = jnp.pad(h0, ((0, B_pad - B), (0, 0)))

    kernel = functools.partial(rnn_agent_seq_kernel, in_dim=IN_pad, hidden_dim=H)

    q_seq, h_T = pl.pallas_call(
        kernel,
        out_shape=(
            jax.ShapeDtypeStruct((T, B_pad, A_pad), out_dtype),
            jax.ShapeDtypeStruct((B_pad, H), jnp.float32),
        ),
        grid=(B_pad // TB, T),
        in_specs=[
            pl.BlockSpec((1, TB, IN_pad), lambda i, t: (t, i, 0)),   # x_t: streamed per step
            pl.BlockSpec((TB, H), lambda i, t: (i, 0)),              # h0: resident per batch tile
            pl.BlockSpec(packed["fc1"].shape, lambda i, t: (0, 0)),  # weights: VMEM-resident
            pl.BlockSpec(packed["gru_i"].shape, lambda i, t: (0, 0)),
            pl.BlockSpec(packed["gru_h"].shape, lambda i, t: (0, 0)),
            pl.BlockSpec(packed["fc2"].shape, lambda i, t: (0, 0)),
        ],
        out_specs=(
            pl.BlockSpec((1, TB, A_pad), lambda i, t: (t, i, 0)),
            pl.BlockSpec((TB, H), lambda i, t: (i, 0)),
        ),
        scratch_shapes=[pltpu.VMEM((TB, H), jnp.float32)],           # carried hidden state
        compiler_params=pltpu.CompilerParams(
            dimension_semantics=("parallel", "arbitrary")),
    )(x, h0, packed["fc1"], packed["gru_i"], packed["gru_h"], packed["fc2"])

    return q_seq[:, :B, :A], h_T[:B]


# TODO(synk): optional fp8 fc2-weight path on v7x (offline-quantized, f32 accumulation)
# is not implemented; dtype plumbing supports bf16 operands only.


# ----------------------------------------------------------------------------
# Pure-JAX reference (torch.nn.GRUCell semantics)
# ----------------------------------------------------------------------------

def _reference_cell(x, h, p):
    x1 = jnp.maximum(x @ p["fc1_w"] + p["fc1_b"], 0.0)
    r = jax.nn.sigmoid(x1 @ p["w_ir"] + p["b_ir"] + h @ p["w_hr"] + p["b_hr"])
    z = jax.nn.sigmoid(x1 @ p["w_iz"] + p["b_iz"] + h @ p["w_hz"] + p["b_hz"])
    n = jnp.tanh(x1 @ p["w_in"] + p["b_in"] + r * (h @ p["w_hn"] + p["b_hn"]))
    h_new = (1.0 - z) * n + z * h
    q = h_new @ p["fc2_w"] + p["fc2_b"]
    return q, h_new


def _reference_forward(inputs, hidden_state, p):
    H = p["fc1_w"].shape[1]
    return _reference_cell(inputs, hidden_state.reshape(-1, H), p)


def _reference_rollout(inputs_seq, hidden_state, p):
    H = p["fc1_w"].shape[1]
    h = hidden_state.reshape(-1, H)
    qs = []
    for t in range(inputs_seq.shape[0]):
        q, h = _reference_cell(inputs_seq[t], h, p)
        qs.append(q)
    return jnp.stack(qs, axis=0), h


if __name__ == "__main__":
    key = jax.random.PRNGKey(0)
    k_param, k_x, k_h, k_seq = jax.random.split(key, 4)

    batch = 8
    input_shape = 40        # e.g. obs dim (+ last-action one-hot) from _build_inputs
    rnn_hidden_dim = 64
    n_actions = 12
    T = 6
    batch_seq = 24          # exercises multi batch-tile + batch padding in the rollout

    params = init_params(k_param, input_shape, rnn_hidden_dim, n_actions)
    inputs = jax.random.normal(k_x, (batch, input_shape), jnp.float32)
    hidden_state = jax.random.normal(k_h, (batch, rnn_hidden_dim), jnp.float32)

    # ---- single step, f32 (exact semantics of the PyTorch module) ----------------
    q_ref, h_ref = _reference_forward(inputs, hidden_state, params)
    packed_f32 = pack_params(params, mm_dtype=jnp.float32)
    q, h_new = rnn_agent_forward(inputs, hidden_state, packed_f32)
    jax.block_until_ready((q, h_new))
    assert q.shape == (batch, n_actions) and h_new.shape == (batch, rnn_hidden_dim)
    assert jnp.allclose(q, q_ref, atol=1e-5, rtol=1e-5)
    assert jnp.allclose(h_new, h_ref, atol=1e-5, rtol=1e-5)

    # ---- single step, bf16 operands (v6e/v7x fast path; f32 accumulation) --------
    packed_bf16 = pack_params(params, mm_dtype=jnp.bfloat16)
    q_bf, h_bf = rnn_agent_forward(inputs, hidden_state, packed_bf16)
    jax.block_until_ready((q_bf, h_bf))
    assert jnp.allclose(q_bf, q_ref, atol=5e-2, rtol=5e-2)
    assert jnp.allclose(h_bf, h_ref, atol=5e-2, rtol=5e-2)

    # ---- whole rollout (T timesteps, single launch, h carried in VMEM) -----------
    seq_inputs = jax.random.normal(k_seq, (T, batch_seq, input_shape), jnp.float32)
    seq_h0 = jnp.zeros((batch_seq, rnn_hidden_dim), jnp.float32)   # == init_hidden()
    q_seq_ref, h_T_ref = _reference_rollout(seq_inputs, seq_h0, params)
    q_seq, h_T = rnn_agent_rollout(seq_inputs, seq_h0, packed_f32)
    jax.block_until_ready((q_seq, h_T))
    assert q_seq.shape == (T, batch_seq, n_actions)
    assert h_T.shape == (batch_seq, rnn_hidden_dim)
    assert jnp.allclose(q_seq, q_seq_ref, atol=5e-4, rtol=5e-4)
    assert jnp.allclose(h_T, h_T_ref, atol=5e-4, rtol=5e-4)

    print("KERNEL_OK")
</pallas_src>

<mosaic_0001>
module attributes {stable_mosaic.version = 11 : i64} {
  func.func @rnn_agent_step_kernel(%arg0: i32, %arg1: memref<8x40xf32, #tpu.memory_space<vmem>>, %arg2: memref<8x64xf32, #tpu.memory_space<vmem>>, %arg3: memref<41x64xf32, #tpu.memory_space<vmem>>, %arg4: memref<65x192xf32, #tpu.memory_space<vmem>>, %arg5: memref<65x192xf32, #tpu.memory_space<vmem>>, %arg6: memref<65x128xf32, #tpu.memory_space<vmem>>, %arg7: memref<8x128xf32, #tpu.memory_space<vmem>>, %arg8: memref<8x64xf32, #tpu.memory_space<vmem>>) attributes {dimension_semantics = [#tpu.dimension_semantics<parallel>], iteration_bounds = array<i64: 1>, scalar_prefetch = 0 : i64, scratch_operands = 0 : i64, tpu.core_type = #tpu.core_type<tc>, window_params = [{transform_indices = @transform_0, window_bounds = array<i64: 8, 40>}, {transform_indices = @transform_1, window_bounds = array<i64: 8, 64>}, {pipeline_mode = #tpu.pipeline_mode<synchronous>, transform_indices = @transform_2, window_bounds = array<i64: 41, 64>}, {pipeline_mode = #tpu.pipeline_mode<synchronous>, transform_indices = @transform_3, window_bounds = array<i64: 65, 192>}, {pipeline_mode = #tpu.pipeline_mode<synchronous>, transform_indices = @transform_4, window_bounds = array<i64: 65, 192>}, {pipeline_mode = #tpu.pipeline_mode<synchronous>, transform_indices = @transform_5, window_bounds = array<i64: 65, 128>}, {transform_indices = @transform_6, window_bounds = array<i64: 8, 128>}, {transform_indices = @transform_7, window_bounds = array<i64: 8, 64>}]} {
    %c0 = arith.constant 0 : index
    %c0_0 = arith.constant 0 : index
    %0 = vector.load %arg1[%c0, %c0_0] : memref<8x40xf32, #tpu.memory_space<vmem>>, vector<8x40xf32>
    %c0_1 = arith.constant 0 : index
    %c0_2 = arith.constant 0 : index
    %1 = vector.load %arg2[%c0_1, %c0_2] : memref<8x64xf32, #tpu.memory_space<vmem>>, vector<8x64xf32>
    %c0_3 = arith.constant 0 : index
    %c0_4 = arith.constant 0 : index
    %2 = vector.load %arg3[%c0_3, %c0_4] : memref<41x64xf32, #tpu.memory_space<vmem>>, vector<40x64xf32>
    %c40 = arith.constant 40 : index
    %c0_5 = arith.constant 0 : index
    %3 = vector.load %arg3[%c40, %c0_5] : memref<41x64xf32, #tpu.memory_space<vmem>>, vector<1x64xf32>
    %cst = arith.constant dense<0.000000e+00> : vector<8x64xf32>
    %4 = tpu.matmul %0, %2, %cst {dimension_numbers = #tpu.dot_dimension_numbers<[1], [0], [0], [1], [0, 0, 1, 1], [], []>} : vector<8x40xf32>, vector<40x64xf32>, vector<8x64xf32> -> vector<8x64xf32>
    %5 = vector.broadcast %3 : vector<1x64xf32> to vector<8x64xf32>
    %6 = arith.addf %4, %5 : vector<8x64xf32>
    %cst_6 = arith.constant 0.000000e+00 : f32
    %7 = vector.broadcast %cst_6 : f32 to vector<8x64xf32>
    %8 = arith.maximumf %6, %7 : vector<8x64xf32>
    %c0_7 = arith.constant 0 : index
    %c0_8 = arith.constant 0 : index
    %9 = vector.load %arg4[%c0_7, %c0_8] : memref<65x192xf32, #tpu.memory_space<vmem>>, vector<64x192xf32>
    %cst_9 = arith.constant dense<0.000000e+00> : vector<8x192xf32>
    %10 = tpu.matmul %8, %9, %cst_9 {dimension_numbers = #tpu.dot_dimension_numbers<[1], [0], [0], [1], [0, 0, 1, 1], [], []>} : vector<8x64xf32>, vector<64x192xf32>, vector<8x192xf32> -> vector<8x192xf32>
    %c64 = arith.constant 64 : index
    %c0_10 = arith.constant 0 : index
    %11 = vector.load %arg4[%c64, %c0_10] : memref<65x192xf32, #tpu.memory_space<vmem>>, vector<1x192xf32>
    %12 = vector.broadcast %11 : vector<1x192xf32> to vector<8x192xf32>
    %13 = arith.addf %10, %12 : vector<8x192xf32>
    %c0_11 = arith.constant 0 : index
    %c0_12 = arith.constant 0 : index
    %14 = vector.load %arg5[%c0_11, %c0_12] : memref<65x192xf32, #tpu.memory_space<vmem>>, vector<64x192xf32>
    %cst_13 = arith.constant dense<0.000000e+00> : vector<8x192xf32>
    %15 = tpu.matmul %1, %14, %cst_13 {dimension_numbers = #tpu.dot_dimension_numbers<[1], [0], [0], [1], [0, 0, 1, 1], [], []>} : vector<8x64xf32>, vector<64x192xf32>, vector<8x192xf32> -> vector<8x192xf32>
    %c64_14 = arith.constant 64 : index
    %c0_15 = arith.constant 0 : index
    %16 = vector.load %arg5[%c64_14, %c0_15] : memref<65x192xf32, #tpu.memory_space<vmem>>, vector<1x192xf32>
    %17 = vector.broadcast %16 : vector<1x192xf32> to vector<8x192xf32>
    %18 = arith.addf %15, %17 : vector<8x192xf32>
    %19 = vector.extract_strided_slice %13 {offsets = [0, 0], sizes = [8, 128], strides = [1, 1]} : vector<8x192xf32> to vector<8x128xf32>
    %20 = vector.extract_strided_slice %18 {offsets = [0, 0], sizes = [8, 128], strides = [1, 1]} : vector<8x192xf32> to vector<8x128xf32>
    %21 = arith.addf %19, %20 : vector<8x128xf32>
    %22 = arith.negf %21 : vector<8x128xf32>
    %23 = math.exp %22 : vector<8x128xf32>
    %cst_16 = arith.constant 1.000000e+00 : f32
    %24 = vector.broadcast %cst_16 : f32 to vector<8x128xf32>
    %25 = arith.addf %24, %23 : vector<8x128xf32>
    %26 = arith.divf %24, %25 : vector<8x128xf32>
    %27 = vector.extract_strided_slice %26 {offsets = [0, 0], sizes = [8, 64], strides = [1, 1]} : vector<8x128xf32> to vector<8x64xf32>
    %28 = vector.extract_strided_slice %26 {offsets = [0, 64], sizes = [8, 64], strides = [1, 1]} : vector<8x128xf32> to vector<8x64xf32>
    %29 = vector.extract_strided_slice %13 {offsets = [0, 128], sizes = [8, 64], strides = [1, 1]} : vector<8x192xf32> to vector<8x64xf32>
    %30 = vector.extract_strided_slice %18 {offsets = [0, 128], sizes = [8, 64], strides = [1, 1]} : vector<8x192xf32> to vector<8x64xf32>
    %31 = arith.mulf %27, %30 : vector<8x64xf32>
    %32 = arith.addf %29, %31 : vector<8x64xf32>
    %33 = math.tanh %32 : vector<8x64xf32>
    %34 = arith.subf %1, %33 : vector<8x64xf32>
    %35 = arith.mulf %28, %34 : vector<8x64xf32>
    %36 = arith.addf %33, %35 : vector<8x64xf32>
    %c0_17 = arith.constant 0 : index
    %c0_18 = arith.constant 0 : index
    %37 = vector.load %arg6[%c0_17, %c0_18] : memref<65x128xf32, #tpu.memory_space<vmem>>, vector<64x128xf32>
    %c64_19 = arith.constant 64 : index
    %c0_20 = arith.constant 0 : index
    %38 = vector.load %arg6[%c64_19, %c0_20] : memref<65x128xf32, #tpu.memory_space<vmem>>, vector<1x128xf32>
    %cst_21 = arith.constant dense<0.000000e+00> : vector<8x128xf32>
    %39 = tpu.matmul %36, %37, %cst_21 {dimension_numbers = #tpu.dot_dimension_numbers<[1], [0], [0], [1], [0, 0, 1, 1], [], []>} : vector<8x64xf32>, vector<64x128xf32>, vector<8x128xf32> -> vector<8x128xf32>
    %40 = vector.broadcast %38 : vector<1x128xf32> to vector<8x128xf32>
    %41 = arith.addf %39, %40 : vector<8x128xf32>
    %c0_22 = arith.constant 0 : index
    %c0_23 = arith.constant 0 : index
    %42 = vector.load %arg7[%c0_22, %c0_23] : memref<8x128xf32, #tpu.memory_space<vmem>>, vector<8x128xf32>
    tpu.vector_store %arg7[%c0_22, %c0_23], %41 {strides = array<i32>} : memref<8x128xf32, #tpu.memory_space<vmem>>, vector<8x128xf32>,
    %c0_24 = arith.constant 0 : index
    %c0_25 = arith.constant 0 : index
    %43 = vector.load %arg8[%c0_24, %c0_25] : memref<8x64xf32, #tpu.memory_space<vmem>>, vector<8x64xf32>
    tpu.vector_store %arg8[%c0_24, %c0_25], %36 {strides = array<i32>} : memref<8x64xf32, #tpu.memory_space<vmem>>, vector<8x64xf32>,
    return
  }
  func.func @transform_0(%arg0: i32) -> (i32, i32) {
    %c0_i32 = arith.constant 0 : i32
    %c0_i32_0 = arith.constant 0 : i32
    return %arg0, %c0_i32 : i32, i32
  }
  func.func @transform_1(%arg0: i32) -> (i32, i32) {
    %c0_i32 = arith.constant 0 : i32
    %c0_i32_0 = arith.constant 0 : i32
    return %arg0, %c0_i32 : i32, i32
  }
  func.func @transform_2(%arg0: i32) -> (i32, i32) {
    %c0_i32 = arith.constant 0 : i32
    %c0_i32_0 = arith.constant 0 : i32
    %c0_i32_1 = arith.constant 0 : i32
    return %c0_i32, %c0_i32_0 : i32, i32
  }
  func.func @transform_3(%arg0: i32) -> (i32, i32) {
    %c0_i32 = arith.constant 0 : i32
    %c0_i32_0 = arith.constant 0 : i32
    %c0_i32_1 = arith.constant 0 : i32
    return %c0_i32, %c0_i32_0 : i32, i32
  }
  func.func @transform_4(%arg0: i32) -> (i32, i32) {
    %c0_i32 = arith.constant 0 : i32
    %c0_i32_0 = arith.constant 0 : i32
    %c0_i32_1 = arith.constant 0 : i32
    return %c0_i32, %c0_i32_0 : i32, i32
  }
  func.func @transform_5(%arg0: i32) -> (i32, i32) {
    %c0_i32 = arith.constant 0 : i32
    %c0_i32_0 = arith.constant 0 : i32
    %c0_i32_1 = arith.constant 0 : i32
    return %c0_i32, %c0_i32_0 : i32, i32
  }
  func.func @transform_6(%arg0: i32) -> (i32, i32) {
    %c0_i32 = arith.constant 0 : i32
    %c0_i32_0 = arith.constant 0 : i32
    return %arg0, %c0_i32 : i32, i32
  }
  func.func @transform_7(%arg0: i32) -> (i32, i32) {
    %c0_i32 = arith.constant 0 : i32
    %c0_i32_0 = arith.constant 0 : i32
    return %arg0, %c0_i32 : i32, i32
  }
}

</mosaic_0001>

<bundles_post_ra>
// kernel: tpu_custom_call.1
= control target key start
LH: loop header
LB: loop body
LE: loop exit
PB: predicated region body
PF: predicated region fallthrough
CT: control target
= control target key end

     0   :  { %13 = vsyncpa [#allocation3], 0  ;;  %s672_s0 = inlined_call_operand.vmem [shape: f32[8,40], index: 0, kind: input, shape index: {}]   ;;  %s673_s1 = inlined_call_operand.hbm [shape: f32[8,64], index: 1, kind: input, shape index: {}, may-alias: {1,7}]   ;;  %s674_s2 = inlined_call_operand.hbm [shape: f32[41,64], index: 2, kind: input, shape index: {}]   ;;  %s675_s3 = inlined_call_operand.hbm [shape: f32[65,192], index: 3, kind: input, shape index: {}]   ;;  %s676_s4 = inlined_call_operand.hbm [shape: f32[65,192], index: 4, kind: input, shape index: {}]   ;;  %s677_s5 = inlined_call_operand.hbm [shape: f32[65,128], index: 5, kind: input, shape index: {}]   ;;  %s678_s6 = inlined_call_operand.hbm [shape: f32[8,128], index: 6, kind: output, shape index: {0}]   ;;  %s679_s7 = inlined_call_operand.hbm [shape: f32[8,64], index: 7, kind: output, shape index: {1}, may-alias: {1,7}]  }
   0x1   :  { %14 = vsyncpa [#allocation6], 0 }
   0x2   :  { %15 = vsyncpa [#allocation9], 0 }
   0x3   :  { %16 = vsyncpa [#allocation4], 0  ;;  %s35_s26 = sshll.u32 %s674_s2, 4  ;;  %s36_s26 = int_to_ptr.hbm [resolvable:$true] %s35_s26 }
   0x4   :  { %17 = vsyncpa [#allocation13], 0  ;;  %s579_s27 = smov [#allocation5]   ;;  %s580_s29 = smov 128  }
   0x5   :  { %s37_s28 = sshll.u32 %s579_s27, 4  ;;  %s581_s30 = smov 8   ;;  %s38_s28 = int_to_ptr.vmem [resolvable:$true] %s37_s28 }
   0x6   :  { %43 = dma.hbm_to_vmem [thread:$0]  %s36_s26, 768, %s38_s28, [#allocation6], %s580_s29, %s580_s29, %s581_s30  }
   0x7   :  { %s61_s10 = sshll.u32 %s676_s4, 4  ;;  %s582_s11 = smov [#allocation8]   ;;  %s62_s10 = int_to_ptr.hbm [resolvable:$true] %s61_s10 }
   0x8   :  { %s63_s12 = sshll.u32 %s582_s11, 4  ;;  %s25_s14 = sshll.u32 %s673_s1, 4  ;;  %s64_s12 = int_to_ptr.vmem [resolvable:$true] %s63_s12  ;;  %s26_s14 = int_to_ptr.hbm [resolvable:$true] %s25_s14 }
   0x9   :  { %s583_s15 = smov 256   ;;  %s584_s16 = smov 16  }
   0xa   :  { %69 = dma.hbm_to_vmem [thread:$0]  %s62_s10, 2304, %s64_s12, [#allocation9], %s583_s15, %s583_s15, %s584_s16  }
   0xb   :  { %s48_s19 = sshll.u32 %s675_s3, 4  ;;  %s585_s20 = smov [#allocation2]   ;;  %s49_s19 = int_to_ptr.hbm [resolvable:$true] %s48_s19 }
   0xc   :  { %s27_s21 = sshll.u32 %s585_s20, 4  ;;  %s586_s4 = smov [#allocation7]   ;;  %s28_s21 = int_to_ptr.vmem [resolvable:$true] %s27_s21 }
   0xd   :  { %30 = dma.hbm_to_vmem [thread:$0]  %s26_s14, 128, %s28_s21, [#allocation3]  }
   0xe   :  { %s50_s22 = sshll.u32 %s586_s4, 4  ;;  %s74_s1 = sshll.u32 %s677_s5, 4  ;;  %s51_s22 = int_to_ptr.vmem [resolvable:$true] %s50_s22  ;;  %s75_s1 = int_to_ptr.hbm [resolvable:$true] %s74_s1 }
   0xf   :  { %56 = dma.hbm_to_vmem [thread:$0]  %s49_s19, 2304, %s51_s22, [#allocation6], %s583_s15, %s583_s15, %s584_s16  }
  0x10   :  { %s587_s25 = smov [#allocation10]  }
  0x11   :  { %s76_s26 = sshll.u32 %s587_s25, 4  ;;  %s77_s26 = int_to_ptr.vmem [resolvable:$true] %s76_s26 }
  0x12   :  { %82 = dma.hbm_to_vmem [thread:$0]  %s75_s1, 1152, %s77_s26, [#allocation9], %s580_s29, %s580_s29, %s581_s30  }
  0x13   :  { %569 = dma.done.wait [#allocation3], 128  }
  0x14   :  { %570 = vsyncadd [#allocation3], 4294967168 }
  0x15   :  { %571 = dma.done.wait [#allocation6], 3072  }
  0x16   :  { %572 = vsyncadd [#allocation6], 4294964224 }
  0x17   :  { %573 = dma.done.wait [#allocation9], 3456  }
  0x18   :  { %574 = vsyncadd [#allocation9], 4294963840  ;;  %v109_v0 = vld [vmem:[#allocation5 + $0x20] sm:$0xff]  ;;  %v108_v1 = vld [vmem:[#allocation5 + $0x18] sm:$0xff]  ;;  %vm112_vm0 = vcmask 326656   ;;  %vm160_vm1 = vcmask 523264  }
  0x19   :  { %127 = vmatpush.msra.mxu0 %v109_v0  ;;  %v107_v2 = vld [vmem:[#allocation5 + $0x10] sm:$0xff]  ;;  %v216_v4 = vld [vmem:[#allocation8 + $0x60] sm:$0xff]  ;;  %v106_v5 = vld [vmem:[#allocation5 + $0x8] sm:$0xff]  ;;  %s589_s27 = smov [#allocation12]   ;;  %s357_s8 = sshll.u32 %s679_s7, 4  ;;  %s358_s8 = int_to_ptr.hbm [resolvable:$true] %s357_s8 }
  0x1a   :  { %v218_v3 = vld [vmem:[#allocation8 + $0x70] sm:$0xff]  ;;  %v151_v6 = vld [vmem:[#allocation7 + $0x70] sm:$0xff]  ;;  %v152_v7 = vld [vmem:[#allocation7 + $0x78] sm:$0xff]  ;;  %s355_s28 = sshll.u32 %s589_s27, 4  ;;  %s590_s9 = smov [#allocation11]   ;;  %s356_s28 = int_to_ptr.vmem [resolvable:$true] %s355_s28 }
  0x1b   :  { %128 = vmatpush.msra.mxu0 %v108_v1  ;;  %238 = vmatpush.msra.mxu3 %v218_v3  ;;  %v214_v8 = vld [vmem:[#allocation8 + $0x50] sm:$0xff]  ;;  %v150_v10 = vld [vmem:[#allocation7 + $0x68] sm:$0xff]  ;;  %v147_v11 = vld [vmem:[#allocation7 + $0x50] sm:$0xff]  ;;  %s344_s10 = sshll.u32 %s590_s9, 4  ;;  %s346_s13 = sshll.u32 %s678_s6, 4  ;;  %s345_s10 = int_to_ptr.vmem [resolvable:$true] %s344_s10  ;;  %s347_s13 = int_to_ptr.hbm [resolvable:$true] %s346_s13 }
  0x1c   :  { %172 = vmatpush.msra.mxu1 %v151_v6  ;;  %192 = vmatpush.msra.mxu2 %v152_v7  ;;  %v149_v9 = vld [vmem:[#allocation7 + $0x60] sm:$0xff]  ;;  %v148_v12 = vld [vmem:[#allocation7 + $0x58] sm:$0xff]  ;;  %v105_v13 = vld [vmem:[#allocation5] sm:$0xff] }
  0x1d   :  { %129 = vmatpush.msra.mxu0 %v107_v2  ;;  %239 = vmatpush.msra.mxu3 %v216_v4  ;;  %v212_v14 = vld [vmem:[#allocation8 + $0x40] sm:$0xff]  ;;  %v103_v15 = vld [vmem:[%s672_s0] sm:$0xff]  ;;  %v145_v16 = vld [vmem:[#allocation7 + $0x40] sm:$0xff]  ;;  %s588_s0 = smov 64  }
  0x1e   :  { %173 = vmatpush.msra.mxu1 %v149_v9  ;;  %193 = vmatpush.msra.mxu2 %v150_v10  ;;  %v210_v17 = vld [vmem:[#allocation8 + $0x30] sm:$0xff]  ;;  %v146_v18 = vld [vmem:[#allocation7 + $0x48] sm:$0xff]  ;;  %v143_v19 = vld [vmem:[#allocation7 + $0x30] sm:$0xff] }
  0x1f   :  { %130 = vmatpush.msra.mxu0 %v106_v5  ;;  %240 = vmatpush.msra.mxu3 %v214_v8  ;;  %v208_v20 = vld [vmem:[#allocation8 + $0x20] sm:$0xff]  ;;  %v144_v21 = vld [vmem:[#allocation7 + $0x38] sm:$0xff]  ;;  %v206_v22 = vld [vmem:[#allocation8 + $0x10] sm:$0xff] }
  0x20   :  { %174 = vmatpush.msra.mxu1 %v147_v11  ;;  %194 = vmatpush.msra.mxu2 %v148_v12  ;;  %v204_v23 = vld [vmem:[#allocation8] sm:$0xff]  ;;  %v655_v24 = vld [vmem:[#allocation2] sm:$0xff]  ;;  %v141_v25 = vld [vmem:[#allocation7 + $0x20] sm:$0xff] }
  0x21   :  { %131 = vmatpush.msra.mxu0 %v105_v13  ;;  %241 = vmatpush.msra.mxu3 %v212_v14  ;;  %v142_v26 = vld [vmem:[#allocation7 + $0x28] sm:$0xff]  ;;  %v139_v27 = vld [vmem:[#allocation7 + $0x10] sm:$0xff]  ;;  %v140_v28 = vld [vmem:[#allocation7 + $0x18] sm:$0xff] }
  0x22   :  { %374 = vmatmul.msk.f32.vlgmr.msra.gmra.mxu0 %vm112_vm0, %v103_v15  ;;  %175 = vmatpush.msra.mxu1 %v145_v16  ;;  %v137_v29 = vld [vmem:[#allocation7] sm:$0xff]  ;;  %v138_v30 = vld [vmem:[#allocation7 + $0x8] sm:$0xff]  ;;  %v217_v32 = vld [vmem:[#allocation8 + $0x68] sm:$0xff] }
  0x23   :  { %242 = vmatpush.msra.mxu3 %v210_v17  ;;  %195 = vmatpush.msra.mxu2 %v146_v18  ;;  %v219_v31 = vld [vmem:[#allocation8 + $0x78] sm:$0xff]  ;;  %v213_v34 = vld [vmem:[#allocation8 + $0x48] sm:$0xff]  ;;  %v310_v12 = vld [vmem:[#allocation10 + $0x30] sm:$0xff] }
  0x24   :  { %176 = vmatpush.msra.mxu1 %v143_v19  ;;  %258 = vmatpush.msrb.mxu0 %v219_v31  ;;  %v215_v33 = vld [vmem:[#allocation8 + $0x58] sm:$0xff]  ;;  %v209_v36 = vld [vmem:[#allocation8 + $0x28] sm:$0xff]  ;;  %v308_v14 = vld [vmem:[#allocation10 + $0x20] sm:$0xff] }
  0x25   :  { %243 = vmatpush.msra.mxu3 %v208_v20  ;;  %196 = vmatpush.msra.mxu2 %v144_v21  ;;  %v211_v35 = vld [vmem:[#allocation8 + $0x38] sm:$0xff]  ;;  %v205_v38 = vld [vmem:[#allocation8 + $0x8] sm:$0xff]  ;;  %v306_v16 = vld [vmem:[#allocation10 + $0x10] sm:$0xff] }
  0x26   :  { %177 = vmatpush.msra.mxu1 %v141_v25  ;;  %259 = vmatpush.msrb.mxu0 %v217_v32  ;;  %v207_v37 = vld [vmem:[#allocation8 + $0x18] sm:$0xff]  ;;  %v393_v39 = vld [vmem:[#allocation5 + $0x28] ss:$0 sm:$0xff]  ;;  %v304_v20 = vld [vmem:[#allocation10] sm:$0xff] }
  0x27   :  { %244 = vmatpush.msra.mxu3 %v206_v22  ;;  %197 = vmatpush.msra.mxu2 %v142_v26  ;;  %v221_v43 = vld [vmem:[#allocation8 + $0x80] ss:$8 sm:$0x3]  ;;  %v154_v44 = vld [vmem:[#allocation7 + $0x80] ss:$8 sm:$0x3] }
  0x28   :  { %178 = vmatpush.msra.mxu1 %v139_v27  ;;  %260 = vmatpush.msrb.mxu0 %v215_v33  ;;  %v223_v45 = vperm.slane %v221_v43, 0  ;;  %v156_v47 = vperm.slane %v154_v44, 0  ;;  %v224_v57 = vperm.slane %v221_v43, 1  ;;  %v157_v63 = vperm.slane %v154_v44, 1  ;;  %v311_v11 = vld [vmem:[#allocation10 + $0x38] sm:$0xff]  ;;  %v309_v13 = vld [vmem:[#allocation10 + $0x28] sm:$0xff] }
  0x29   :  { %245 = vmatpush.msra.mxu3 %v204_v23  ;;  %198 = vmatpush.msra.mxu2 %v140_v28  ;;  %v307_v15 = vld [vmem:[#allocation10 + $0x18] sm:$0xff]  ;;  %v305_v17 = vld [vmem:[#allocation10 + $0x8] sm:$0xff]  ;;  %v394_v23 = vld [vmem:[#allocation10 + $0x40] ss:$0 sm:$0xff] }
  0x2a   :  { %377 = vmatmul.msk.f32.vlgmr.msra.gmra.mxu3 %vm160_vm1, %v655_v24  ;;  %179 = vmatpush.msra.mxu1 %v137_v29 }
  0x2b   :  { %199 = vmatpush.msra.mxu2 %v138_v30  ;;  %261 = vmatpush.msrb.mxu0 %v213_v34 }
  0x2c   :  { %325 = vmatpush.msrb.mxu1 %v311_v11 }
  0x2d   :  { %262 = vmatpush.msrb.mxu0 %v211_v35 }
  0x2e   :  { %326 = vmatpush.msrb.mxu1 %v310_v12 }
  0x2f   :  { %263 = vmatpush.msrb.mxu0 %v209_v36 }
  0x30   :  { %327 = vmatpush.msrb.mxu1 %v309_v13 }
  0x31   :  { %264 = vmatpush.msrb.mxu0 %v207_v37 }
  0x32   :  { %328 = vmatpush.msrb.mxu1 %v308_v14 }
  0x33   :  { %265 = vmatpush.msrb.mxu0 %v205_v38 }
  0x34   :  { %378 = vmatmul.msk.f32.vlgmr.msrb.gmra.mxu0 %vm160_vm1, %v655_v24  ;;  %329 = vmatpush.msrb.mxu1 %v307_v15 }
  0x36   :  { %330 = vmatpush.msrb.mxu1 %v306_v16 }
  0x38   :  { %331 = vmatpush.msrb.mxu1 %v305_v17 }
  0x3a   :  { %332 = vmatpush.msrb.mxu1 %v304_v20 }
  0x9f   :  { %v133_v40 = vpop.f32.mrf.mxu0 }
  0xa0   :  { %v134_v41 = vadd.f32 %v393_v39, %v133_v40 }
  0xa2   :  { %v136_v42 = vmax.f32 %v134_v41, 0.0 }
  0xa4   :  { %375 = vmatmul.msk.f32.vlgmr.msra.gmra.mxu1 %vm160_vm1, %v136_v42  ;;  %376 = vmatmul.msk.f32.vlgmr.msra.gmra.mxu2 %vm160_vm1, %v136_v42 }
  0xad   :  { %v247_v46 = vpop.f32.mrf.mxu3 }
  0xae   :  { %v248_v48 = vadd.f32 %v247_v46, %v223_v45 }
  0xb1   :  { %v267_v59 = vpop.f32.mrf.mxu0 }
  0xb2   :  { %v268_v0 = vadd.f32 %v267_v59, %v224_v57 }
 0x121   :  { %v181_v49 = vpop.f32.mrf.mxu1 }
 0x122   :  { %v182_v50 = vadd.f32 %v181_v49, %v156_v47 }
 0x124   :  { %v270_v51 = vadd.f32 %v248_v48, %v182_v50 }
 0x126   :  { %v379_v52 = vmul.f32 -1.442695, %v270_v51 }
 0x127   :  { %v201_v2 = vpop.f32.mrf.mxu2 }
 0x128   :  { %395 = vpow2.f32 %v379_v52  ;;  %v202_v6 = vadd.f32 %v201_v2, %v157_v63 }
 0x12e   :  { %v396_v53 = vpop.eup %395 }
 0x12f   :  { %v274_v54 = vadd.f32 1.0, %v396_v53 }
 0x131   :  { %397 = vrcp.f32 %v274_v54  ;;  %v286_v60 = vand.u32 2147483648, %v274_v54  ;;  %v284_v62 = vand.u32 2147483647, %v274_v54  ;;  %vm280_vm3 = vweird.f32 %v274_v54 }
 0x133   :  { %v287_v3 = vor.u32 1.1754944e-38, %v286_v60  ;;  %vm285_vm5 = vcmp.eq.f32.partialorder %v284_v62, 8.507059e+37 }
 0x137   :  { %v398_v55 = vpop.eup %397 }
 0x138   :  { %v276_v56 = vmul.f32 %v398_v55, %v274_v54  ;;  %vm281_vm2 = vweird.f32 %v398_v55 }
 0x139   :  { %vm282_vm4 = vmor %vm280_vm3, %vm281_vm2 }
 0x13a   :  { %v277_v58 = vsub.f32 1.0, %v276_v56 }
 0x13c   :  { %v278_v61 = vmul.f32 %v398_v55, %v277_v58 }
 0x13e   :  { %v279_v1 = vadd.f32 %v398_v55, %v278_v61 }
 0x140   :  { %v283_v4 = vsel %vm282_vm4, %v398_v55, %v279_v1 }
 0x141   :  { %v288_v5 = vsel %vm285_vm5, %v287_v3, %v283_v4 }
 0x142   :  { %v290_v7 = vmul.f32 %v288_v5, %v268_v0 }
 0x144   :  { %v291_v8 = vadd.f32 %v290_v7, %v202_v6 }
 0x146   :  { %399 = vtanh.f32 %v291_v8 }
 0x14c   :  { %v400_v9 = vpop.eup %399 }
 0x14d   :  { %v293_v10 = vsub.f32 %v655_v24, %v400_v9 }
 0x14f   :  { %295 = vrot.lane.b32.xlu0 %v293_v10, %s588_s0 }
 0x1c1   :  { %v296_v18 = vpop.permute.xlu0 %295 }
 0x1c2   :  { %v298_v19 = vmul.f32 %v296_v18, %v288_v5 }
 0x1c4   :  { %300 = vrot.lane.b32.xlu0 %v298_v19, %s588_s0 }
 0x236   :  { %v301_v21 = vpop.permute.xlu0 %300 }
 0x237   :  { %v303_v22 = vadd.f32 %v400_v9, %v301_v21 }
 0x239   :  { %338 = vst.msk [vmem:[#allocation12] sm:$0xff] %vm160_vm1, %v303_v22  ;;  %380 = vmatmul.msk.f32.vlgmr.msrb.gmra.mxu1 %vm160_vm1, %v303_v22 }
 0x23a   :  { %360 = dma.vmem_to_hbm [thread:$0]  %s356_s28, 128, %s358_s8, [#allocation13]  }
 0x2b6   :  { %v334_v24 = vpop.f32.mrf.mxu1 }
 0x2b7   :  { %v335_v25 = vadd.f32 %v394_v23, %v334_v24 }
 0x2b9   :  { %337 = vst [vmem:[#allocation11] sm:$0xff] %v335_v25 }
 0x2ba   :  { %349 = dma.vmem_to_hbm [thread:$0]  %s345_s10, 128, %s347_s13, [#allocation4]  }
 0x2bb   :  { %575 = dma.done.wait [#allocation4], 128  }
 0x2bc   :  { %576 = vsyncadd [#allocation4], 4294967168 }
 0x2bd   :  { %577 = dma.done.wait [#allocation13], 128  }
 0x2be   :  { %578 = vsyncadd [#allocation13], 4294967168 }
 0x2bf   :  { %369 = vsyncpa [#allocation3], 1 }
 0x2c0   :  { %370 = vsyncpa [#allocation6], 1 }
 0x2c1   :  { %371 = vsyncpa [#allocation9], 1 }
 0x2c2   :  { %372 = vsyncpa [#allocation4], 1 }
 0x2c3   :  { %373 = vsyncpa [#allocation13], 1 }

</bundles_post_ra>
